<compile_context>
chip_gen: v6e
topology: v6e:2x2x1
jax: 0.10.0
libtpu: 0.0.40
codegen_flags: <defaults>
</compile_context>

<pallas_src>
import jax
import jax.numpy as jnp
from jax.experimental import pallas as pl
from jax.experimental.pallas import tpu as pltpu


def _pick_tiles(bs, na, C, HW, itemsize):
    """Choose (batch-pack Bt, HW-tile T) so each grid step moves ~0.5 MB of input."""
    T = HW
    if HW > 1024:
        for t in (2048, 1024, 512, 256, 128):
            if HW % t == 0:            # exact lane-aligned divisor -> no ragged tail
                T = t
                break
        else:
            T = 1024                   # ragged last tile: reads padded, writes masked
    Bt = 1
    if T == HW:                        # small head: pack batch elements instead
        per_elem = na * C * HW * itemsize
        Bt = min(bs, 8, max(1, (512 * 1024) // max(per_elem, 1)))
        while bs % Bt:                 # keep the batch axis un-ragged
            Bt -= 1
    return int(Bt), int(T)


def yolov3_layer(x, anchors, num_classes, img_size=416, channels_last=True):
    """JAX/Pallas equivalent of YOLOv3Layer.forward(x, img_size).

    x       : (bs, na*(5+nc), ny, nx) float  (NCHW, like PyTorch)
    anchors : (na, 2) float -- (w, h) anchor sizes in input-image pixels
    returns : (bs, na, ny, nx, 5+nc)  (or (bs, na, 5+nc, ny, nx) if channels_last=False)
    """
    bs, ch, ny, nx = x.shape
    na = anchors.shape[0]
    C = 5 + num_classes
    assert ch == na * C, f"channel dim {ch} != na*(5+nc) = {na * C}"
    HW = ny * nx
    itm = x.dtype.itemsize

    Bt, T = _pick_tiles(bs, na, C, HW, itm)
    NB = bs // Bt
    NH = pl.cdiv(HW, T)

    x5 = x.reshape(bs, na, C, HW)              # free view of the NCHW input

    f32 = jnp.float32
    # Per-(anchor, row) multiplicative constants for rows 0..3:
    #   rows 0,1 -> 1/nx, 1/ny              (applied to sigmoid(x))
    #   rows 2,3 -> anchors / img_size      (applied to exp(x); == (anchors/pxc)/ng)
    scale4 = jnp.zeros((na, 4, 1), dtype=f32)
    scale4 = scale4.at[:, 0, 0].set(1.0 / nx)
    scale4 = scale4.at[:, 1, 0].set(1.0 / ny)
    scale4 = scale4.at[:, 2, 0].set(anchors[:, 0].astype(f32) / img_size)
    scale4 = scale4.at[:, 3, 0].set(anchors[:, 1].astype(f32) / img_size)
    # Additive grid offsets for the xy rows only (padded to 8 sublanes).
    pos = jnp.arange(HW, dtype=jnp.int32)
    grid_off = jnp.zeros((8, HW), dtype=f32)
    grid_off = grid_off.at[0].set((pos % nx).astype(f32) * (1.0 / nx))
    grid_off = grid_off.at[1].set((pos // nx).astype(f32) * (1.0 / ny))

    def kernel(x_ref, sc_ref, off_ref, o_ref):
        off = off_ref[0:2, :]                              # (2, T)
        for b in range(Bt):                                # static unroll (small)
            for a in range(na):
                xa = x_ref[b, a].astype(f32)               # (C, T) lane-dense
                sig = jax.nn.sigmoid(xa)
                # Bulk lane-dense store: objectness + classes (rows 0:4 fixed below).
                o_ref[b, a] = sig.astype(o_ref.dtype)
                # xy rows: sigmoid * (1/nx, 1/ny) + grid offset.
                o_ref[b, a, 0:2, :] = (
                    sig[0:2, :] * sc_ref[a, 0:2, :] + off).astype(o_ref.dtype)
                # wh rows: exp * anchors/img_size (exp evaluated ONLY on these 2 rows).
                o_ref[b, a, 2:4, :] = (
                    jnp.exp(xa[2:4, :]) * sc_ref[a, 2:4, :]).astype(o_ref.dtype)

    # VMEM budget: double-buffered in/out blocks + resident constants + f32 temps.
    lane_T = -(-T // 128) * 128
    sub_C = -(-C // 8) * 8
    blk_io = Bt * na * sub_C * lane_T * itm                # one in OR out block (padded)
    const_b = 2 * (8 * lane_T * 4) + 2 * (na * 8 * 128 * 4)
    interm = 2 * sub_C * lane_T * 4                        # live sig + xa per iteration
    vmem_limit = int(min(max(2 * 2 * blk_io + const_b + interm + (2 << 20),
                             16 << 20), 48 << 20))

    out_cm = pl.pallas_call(
        kernel,
        out_shape=jax.ShapeDtypeStruct((bs, na, C, HW), x.dtype),
        grid_spec=pltpu.PrefetchScalarGridSpec(
            num_scalar_prefetch=0,
            grid=(NB, NH),
            in_specs=[
                pl.BlockSpec((Bt, na, C, T), lambda i, h: (i, 0, 0, h)),
                pl.BlockSpec((na, 4, 1), lambda i, h: (0, 0, 0)),   # resident constant
                pl.BlockSpec((8, T), lambda i, h: (0, h)),          # xy grid offsets
            ],
            out_specs=pl.BlockSpec((Bt, na, C, T), lambda i, h: (i, 0, 0, h)),
        ),
        compiler_params=pltpu.CompilerParams(
            dimension_semantics=("parallel", "parallel"),
            vmem_limit_bytes=vmem_limit),
    )(x5, scale4, grid_off)

    out_cm = out_cm.reshape(bs, na, C, ny, nx)
    if not channels_last:
        return out_cm
    # Channel-last permute done once in XLA (kernel stores stay lane-dense).
    return out_cm.transpose(0, 1, 3, 4, 2)                 # (bs, na, ny, nx, C)


def _reference(x, anchors, num_classes, img_size=416):
    """Pure-JAX reference mirroring the PyTorch forward, for verification."""
    bs, _, ny, nx = x.shape
    na = anchors.shape[0]
    C = 5 + num_classes
    xr = x.reshape(bs, na, C, ny, nx).transpose(0, 1, 3, 4, 2)  # (bs,na,ny,nx,C)

    pxc = jnp.array([img_size / nx, img_size / ny], dtype=jnp.float32)
    ag = (anchors.astype(jnp.float32) / pxc).reshape(1, na, 1, 1, 2)
    oy, ox = jnp.meshgrid(jnp.arange(ny), jnp.arange(nx), indexing="ij")
    og = jnp.stack((ox, oy), axis=2).reshape(1, 1, ny, nx, 2).astype(x.dtype)

    xy = jax.nn.sigmoid(xr[..., 0:2]) + og
    wh = jnp.exp(xr[..., 2:4]) * ag
    xy = xy / jnp.array([nx, ny], dtype=x.dtype)
    wh = wh / jnp.array([nx, ny], dtype=x.dtype)
    rest = jax.nn.sigmoid(xr[..., 4:])
    return jnp.concatenate([xy, wh, rest], axis=-1)


if __name__ == "__main__":
    # Deterministic small-shape example (YOLOv3-tiny first head anchors).
    key = jax.random.PRNGKey(0)
    bs, nc, ny, nx = 2, 3, 16, 16
    anchors = jnp.array([[10.0, 14.0], [23.0, 27.0], [37.0, 58.0]],
                        dtype=jnp.float32)
    na = anchors.shape[0]
    C = 5 + nc
    img_size = 416

    x = jax.random.normal(key, (bs, na * C, ny, nx), dtype=jnp.float32)

    out = yolov3_layer(x, anchors, nc, img_size=img_size)
    out = jax.block_until_ready(out)

    ref = _reference(x, anchors, nc, img_size=img_size)
    assert out.shape == (bs, na, ny, nx, C)
    assert jnp.allclose(out, ref, rtol=1e-5, atol=1e-5), "mismatch vs reference"

    print("KERNEL_OK")
</pallas_src>

<mosaic_0001>
module attributes {stable_mosaic.version = 11 : i64} {
  func.func @kernel(%arg0: i32, %arg1: i32, %arg2: memref<2x3x8x256xf32, #tpu.memory_space<vmem>>, %arg3: memref<3x4x1xf32, #tpu.memory_space<vmem>>, %arg4: memref<8x256xf32, #tpu.memory_space<vmem>>, %arg5: memref<2x3x8x256xf32, #tpu.memory_space<vmem>>) attributes {dimension_semantics = [#tpu.dimension_semantics<parallel>, #tpu.dimension_semantics<parallel>], iteration_bounds = array<i64: 1, 1>, scalar_prefetch = 0 : i64, scratch_operands = 0 : i64, tpu.core_type = #tpu.core_type<tc>, window_params = [{transform_indices = @transform_0, window_bounds = array<i64: 2, 3, 8, 256>}, {pipeline_mode = #tpu.pipeline_mode<synchronous>, transform_indices = @transform_1, window_bounds = array<i64: 3, 4, 1>}, {transform_indices = @transform_2, window_bounds = array<i64: 8, 256>}, {transform_indices = @transform_3, window_bounds = array<i64: 2, 3, 8, 256>}]} {
    %c0 = arith.constant 0 : index
    %c0_0 = arith.constant 0 : index
    %0 = vector.load %arg4[%c0, %c0_0] : memref<8x256xf32, #tpu.memory_space<vmem>>, vector<2x256xf32>
    %c0_1 = arith.constant 0 : index
    %c0_2 = arith.constant 0 : index
    %c0_3 = arith.constant 0 : index
    %c0_4 = arith.constant 0 : index
    %1 = vector.load %arg2[%c0_1, %c0_2, %c0_3, %c0_4] : memref<2x3x8x256xf32, #tpu.memory_space<vmem>>, vector<1x1x8x256xf32>
    %2 = vector.shape_cast %1 : vector<1x1x8x256xf32> to vector<8x256xf32>
    %3 = arith.negf %2 : vector<8x256xf32>
    %4 = math.exp %3 : vector<8x256xf32>
    %cst = arith.constant 1.000000e+00 : f32
    %5 = vector.broadcast %cst : f32 to vector<8x256xf32>
    %6 = arith.addf %5, %4 : vector<8x256xf32>
    %7 = arith.divf %5, %6 : vector<8x256xf32>
    %c0_5 = arith.constant 0 : index
    %c0_6 = arith.constant 0 : index
    %c0_7 = arith.constant 0 : index
    %c0_8 = arith.constant 0 : index
    %8 = vector.load %arg5[%c0_5, %c0_6, %c0_7, %c0_8] : memref<2x3x8x256xf32, #tpu.memory_space<vmem>>, vector<1x1x8x256xf32>
    %9 = vector.shape_cast %8 : vector<1x1x8x256xf32> to vector<8x256xf32>
    %10 = vector.shape_cast %7 : vector<8x256xf32> to vector<1x1x8x256xf32>
    tpu.vector_store %arg5[%c0_5, %c0_6, %c0_7, %c0_8], %10 {strides = array<i32>} : memref<2x3x8x256xf32, #tpu.memory_space<vmem>>, vector<1x1x8x256xf32>,
    %11 = vector.extract_strided_slice %7 {offsets = [0, 0], sizes = [2, 256], strides = [1, 1]} : vector<8x256xf32> to vector<2x256xf32>
    %c0_9 = arith.constant 0 : index
    %c0_10 = arith.constant 0 : index
    %c0_11 = arith.constant 0 : index
    %12 = vector.load %arg3[%c0_9, %c0_10, %c0_11] : memref<3x4x1xf32, #tpu.memory_space<vmem>>, vector<1x2x1xf32>
    %13 = vector.shape_cast %12 : vector<1x2x1xf32> to vector<2x1xf32>
    %14 = vector.broadcast %13 : vector<2x1xf32> to vector<2x256xf32>
    %15 = arith.mulf %11, %14 : vector<2x256xf32>
    %16 = arith.addf %15, %0 : vector<2x256xf32>
    %c0_12 = arith.constant 0 : index
    %c0_13 = arith.constant 0 : index
    %c0_14 = arith.constant 0 : index
    %c0_15 = arith.constant 0 : index
    %17 = vector.load %arg5[%c0_12, %c0_13, %c0_14, %c0_15] : memref<2x3x8x256xf32, #tpu.memory_space<vmem>>, vector<1x1x2x256xf32>
    %18 = vector.shape_cast %17 : vector<1x1x2x256xf32> to vector<2x256xf32>
    %19 = vector.shape_cast %16 : vector<2x256xf32> to vector<1x1x2x256xf32>
    tpu.vector_store %arg5[%c0_12, %c0_13, %c0_14, %c0_15], %19 {strides = array<i32>} : memref<2x3x8x256xf32, #tpu.memory_space<vmem>>, vector<1x1x2x256xf32>,
    %20 = vector.extract_strided_slice %2 {offsets = [2, 0], sizes = [2, 256], strides = [1, 1]} : vector<8x256xf32> to vector<2x256xf32>
    %21 = math.exp %20 : vector<2x256xf32>
    %c0_16 = arith.constant 0 : index
    %c2 = arith.constant 2 : index
    %c0_17 = arith.constant 0 : index
    %22 = vector.load %arg3[%c0_16, %c2, %c0_17] : memref<3x4x1xf32, #tpu.memory_space<vmem>>, vector<1x2x1xf32>
    %23 = vector.shape_cast %22 : vector<1x2x1xf32> to vector<2x1xf32>
    %24 = vector.broadcast %23 : vector<2x1xf32> to vector<2x256xf32>
    %25 = arith.mulf %21, %24 : vector<2x256xf32>
    %c0_18 = arith.constant 0 : index
    %c0_19 = arith.constant 0 : index
    %c2_20 = arith.constant 2 : index
    %c0_21 = arith.constant 0 : index
    %26 = vector.load %arg5[%c0_18, %c0_19, %c2_20, %c0_21] : memref<2x3x8x256xf32, #tpu.memory_space<vmem>>, vector<1x1x2x256xf32>
    %27 = vector.shape_cast %26 : vector<1x1x2x256xf32> to vector<2x256xf32>
    %28 = vector.shape_cast %25 : vector<2x256xf32> to vector<1x1x2x256xf32>
    tpu.vector_store %arg5[%c0_18, %c0_19, %c2_20, %c0_21], %28 {strides = array<i32>} : memref<2x3x8x256xf32, #tpu.memory_space<vmem>>, vector<1x1x2x256xf32>,
    %c0_22 = arith.constant 0 : index
    %c1 = arith.constant 1 : index
    %c0_23 = arith.constant 0 : index
    %c0_24 = arith.constant 0 : index
    %29 = vector.load %arg2[%c0_22, %c1, %c0_23, %c0_24] : memref<2x3x8x256xf32, #tpu.memory_space<vmem>>, vector<1x1x8x256xf32>
    %30 = vector.shape_cast %29 : vector<1x1x8x256xf32> to vector<8x256xf32>
    %31 = arith.negf %30 : vector<8x256xf32>
    %32 = math.exp %31 : vector<8x256xf32>
    %cst_25 = arith.constant 1.000000e+00 : f32
    %33 = vector.broadcast %cst_25 : f32 to vector<8x256xf32>
    %34 = arith.addf %33, %32 : vector<8x256xf32>
    %35 = arith.divf %33, %34 : vector<8x256xf32>
    %c0_26 = arith.constant 0 : index
    %c1_27 = arith.constant 1 : index
    %c0_28 = arith.constant 0 : index
    %c0_29 = arith.constant 0 : index
    %36 = vector.load %arg5[%c0_26, %c1_27, %c0_28, %c0_29] : memref<2x3x8x256xf32, #tpu.memory_space<vmem>>, vector<1x1x8x256xf32>
    %37 = vector.shape_cast %36 : vector<1x1x8x256xf32> to vector<8x256xf32>
    %38 = vector.shape_cast %35 : vector<8x256xf32> to vector<1x1x8x256xf32>
    tpu.vector_store %arg5[%c0_26, %c1_27, %c0_28, %c0_29], %38 {strides = array<i32>} : memref<2x3x8x256xf32, #tpu.memory_space<vmem>>, vector<1x1x8x256xf32>,
    %39 = vector.extract_strided_slice %35 {offsets = [0, 0], sizes = [2, 256], strides = [1, 1]} : vector<8x256xf32> to vector<2x256xf32>
    %c1_30 = arith.constant 1 : index
    %c0_31 = arith.constant 0 : index
    %c0_32 = arith.constant 0 : index
    %40 = vector.load %arg3[%c1_30, %c0_31, %c0_32] : memref<3x4x1xf32, #tpu.memory_space<vmem>>, vector<1x2x1xf32>
    %41 = vector.shape_cast %40 : vector<1x2x1xf32> to vector<2x1xf32>
    %42 = vector.broadcast %41 : vector<2x1xf32> to vector<2x256xf32>
    %43 = arith.mulf %39, %42 : vector<2x256xf32>
    %44 = arith.addf %43, %0 : vector<2x256xf32>
    %c0_33 = arith.constant 0 : index
    %c1_34 = arith.constant 1 : index
    %c0_35 = arith.constant 0 : index
    %c0_36 = arith.constant 0 : index
    %45 = vector.load %arg5[%c0_33, %c1_34, %c0_35, %c0_36] : memref<2x3x8x256xf32, #tpu.memory_space<vmem>>, vector<1x1x2x256xf32>
    %46 = vector.shape_cast %45 : vector<1x1x2x256xf32> to vector<2x256xf32>
    %47 = vector.shape_cast %44 : vector<2x256xf32> to vector<1x1x2x256xf32>
    tpu.vector_store %arg5[%c0_33, %c1_34, %c0_35, %c0_36], %47 {strides = array<i32>} : memref<2x3x8x256xf32, #tpu.memory_space<vmem>>, vector<1x1x2x256xf32>,
    %48 = vector.extract_strided_slice %30 {offsets = [2, 0], sizes = [2, 256], strides = [1, 1]} : vector<8x256xf32> to vector<2x256xf32>
    %49 = math.exp %48 : vector<2x256xf32>
    %c1_37 = arith.constant 1 : index
    %c2_38 = arith.constant 2 : index
    %c0_39 = arith.constant 0 : index
    %50 = vector.load %arg3[%c1_37, %c2_38, %c0_39] : memref<3x4x1xf32, #tpu.memory_space<vmem>>, vector<1x2x1xf32>
    %51 = vector.shape_cast %50 : vector<1x2x1xf32> to vector<2x1xf32>
    %52 = vector.broadcast %51 : vector<2x1xf32> to vector<2x256xf32>
    %53 = arith.mulf %49, %52 : vector<2x256xf32>
    %c0_40 = arith.constant 0 : index
    %c1_41 = arith.constant 1 : index
    %c2_42 = arith.constant 2 : index
    %c0_43 = arith.constant 0 : index
    %54 = vector.load %arg5[%c0_40, %c1_41, %c2_42, %c0_43] : memref<2x3x8x256xf32, #tpu.memory_space<vmem>>, vector<1x1x2x256xf32>
    %55 = vector.shape_cast %54 : vector<1x1x2x256xf32> to vector<2x256xf32>
    %56 = vector.shape_cast %53 : vector<2x256xf32> to vector<1x1x2x256xf32>
    tpu.vector_store %arg5[%c0_40, %c1_41, %c2_42, %c0_43], %56 {strides = array<i32>} : memref<2x3x8x256xf32, #tpu.memory_space<vmem>>, vector<1x1x2x256xf32>,
    %c0_44 = arith.constant 0 : index
    %c2_45 = arith.constant 2 : index
    %c0_46 = arith.constant 0 : index
    %c0_47 = arith.constant 0 : index
    %57 = vector.load %arg2[%c0_44, %c2_45, %c0_46, %c0_47] : memref<2x3x8x256xf32, #tpu.memory_space<vmem>>, vector<1x1x8x256xf32>
    %58 = vector.shape_cast %57 : vector<1x1x8x256xf32> to vector<8x256xf32>
    %59 = arith.negf %58 : vector<8x256xf32>
    %60 = math.exp %59 : vector<8x256xf32>
    %cst_48 = arith.constant 1.000000e+00 : f32
    %61 = vector.broadcast %cst_48 : f32 to vector<8x256xf32>
    %62 = arith.addf %61, %60 : vector<8x256xf32>
    %63 = arith.divf %61, %62 : vector<8x256xf32>
    %c0_49 = arith.constant 0 : index
    %c2_50 = arith.constant 2 : index
    %c0_51 = arith.constant 0 : index
    %c0_52 = arith.constant 0 : index
    %64 = vector.load %arg5[%c0_49, %c2_50, %c0_51, %c0_52] : memref<2x3x8x256xf32, #tpu.memory_space<vmem>>, vector<1x1x8x256xf32>
    %65 = vector.shape_cast %64 : vector<1x1x8x256xf32> to vector<8x256xf32>
    %66 = vector.shape_cast %63 : vector<8x256xf32> to vector<1x1x8x256xf32>
    tpu.vector_store %arg5[%c0_49, %c2_50, %c0_51, %c0_52], %66 {strides = array<i32>} : memref<2x3x8x256xf32, #tpu.memory_space<vmem>>, vector<1x1x8x256xf32>,
    %67 = vector.extract_strided_slice %63 {offsets = [0, 0], sizes = [2, 256], strides = [1, 1]} : vector<8x256xf32> to vector<2x256xf32>
    %c2_53 = arith.constant 2 : index
    %c0_54 = arith.constant 0 : index
    %c0_55 = arith.constant 0 : index
    %68 = vector.load %arg3[%c2_53, %c0_54, %c0_55] : memref<3x4x1xf32, #tpu.memory_space<vmem>>, vector<1x2x1xf32>
    %69 = vector.shape_cast %68 : vector<1x2x1xf32> to vector<2x1xf32>
    %70 = vector.broadcast %69 : vector<2x1xf32> to vector<2x256xf32>
    %71 = arith.mulf %67, %70 : vector<2x256xf32>
    %72 = arith.addf %71, %0 : vector<2x256xf32>
    %c0_56 = arith.constant 0 : index
    %c2_57 = arith.constant 2 : index
    %c0_58 = arith.constant 0 : index
    %c0_59 = arith.constant 0 : index
    %73 = vector.load %arg5[%c0_56, %c2_57, %c0_58, %c0_59] : memref<2x3x8x256xf32, #tpu.memory_space<vmem>>, vector<1x1x2x256xf32>
    %74 = vector.shape_cast %73 : vector<1x1x2x256xf32> to vector<2x256xf32>
    %75 = vector.shape_cast %72 : vector<2x256xf32> to vector<1x1x2x256xf32>
    tpu.vector_store %arg5[%c0_56, %c2_57, %c0_58, %c0_59], %75 {strides = array<i32>} : memref<2x3x8x256xf32, #tpu.memory_space<vmem>>, vector<1x1x2x256xf32>,
    %76 = vector.extract_strided_slice %58 {offsets = [2, 0], sizes = [2, 256], strides = [1, 1]} : vector<8x256xf32> to vector<2x256xf32>
    %77 = math.exp %76 : vector<2x256xf32>
    %c2_60 = arith.constant 2 : index
    %c2_61 = arith.constant 2 : index
    %c0_62 = arith.constant 0 : index
    %78 = vector.load %arg3[%c2_60, %c2_61, %c0_62] : memref<3x4x1xf32, #tpu.memory_space<vmem>>, vector<1x2x1xf32>
    %79 = vector.shape_cast %78 : vector<1x2x1xf32> to vector<2x1xf32>
    %80 = vector.broadcast %79 : vector<2x1xf32> to vector<2x256xf32>
    %81 = arith.mulf %77, %80 : vector<2x256xf32>
    %c0_63 = arith.constant 0 : index
    %c2_64 = arith.constant 2 : index
    %c2_65 = arith.constant 2 : index
    %c0_66 = arith.constant 0 : index
    %82 = vector.load %arg5[%c0_63, %c2_64, %c2_65, %c0_66] : memref<2x3x8x256xf32, #tpu.memory_space<vmem>>, vector<1x1x2x256xf32>
    %83 = vector.shape_cast %82 : vector<1x1x2x256xf32> to vector<2x256xf32>
    %84 = vector.shape_cast %81 : vector<2x256xf32> to vector<1x1x2x256xf32>
    tpu.vector_store %arg5[%c0_63, %c2_64, %c2_65, %c0_66], %84 {strides = array<i32>} : memref<2x3x8x256xf32, #tpu.memory_space<vmem>>, vector<1x1x2x256xf32>,
    %c1_67 = arith.constant 1 : index
    %c0_68 = arith.constant 0 : index
    %c0_69 = arith.constant 0 : index
    %c0_70 = arith.constant 0 : index
    %85 = vector.load %arg2[%c1_67, %c0_68, %c0_69, %c0_70] : memref<2x3x8x256xf32, #tpu.memory_space<vmem>>, vector<1x1x8x256xf32>
    %86 = vector.shape_cast %85 : vector<1x1x8x256xf32> to vector<8x256xf32>
    %87 = arith.negf %86 : vector<8x256xf32>
    %88 = math.exp %87 : vector<8x256xf32>
    %cst_71 = arith.constant 1.000000e+00 : f32
    %89 = vector.broadcast %cst_71 : f32 to vector<8x256xf32>
    %90 = arith.addf %89, %88 : vector<8x256xf32>
    %91 = arith.divf %89, %90 : vector<8x256xf32>
    %c1_72 = arith.constant 1 : index
    %c0_73 = arith.constant 0 : index
    %c0_74 = arith.constant 0 : index
    %c0_75 = arith.constant 0 : index
    %92 = vector.load %arg5[%c1_72, %c0_73, %c0_74, %c0_75] : memref<2x3x8x256xf32, #tpu.memory_space<vmem>>, vector<1x1x8x256xf32>
    %93 = vector.shape_cast %92 : vector<1x1x8x256xf32> to vector<8x256xf32>
    %94 = vector.shape_cast %91 : vector<8x256xf32> to vector<1x1x8x256xf32>
    tpu.vector_store %arg5[%c1_72, %c0_73, %c0_74, %c0_75], %94 {strides = array<i32>} : memref<2x3x8x256xf32, #tpu.memory_space<vmem>>, vector<1x1x8x256xf32>,
    %95 = vector.extract_strided_slice %91 {offsets = [0, 0], sizes = [2, 256], strides = [1, 1]} : vector<8x256xf32> to vector<2x256xf32>
    %c0_76 = arith.constant 0 : index
    %c0_77 = arith.constant 0 : index
    %c0_78 = arith.constant 0 : index
    %96 = vector.load %arg3[%c0_76, %c0_77, %c0_78] : memref<3x4x1xf32, #tpu.memory_space<vmem>>, vector<1x2x1xf32>
    %97 = vector.shape_cast %96 : vector<1x2x1xf32> to vector<2x1xf32>
    %98 = vector.broadcast %97 : vector<2x1xf32> to vector<2x256xf32>
    %99 = arith.mulf %95, %98 : vector<2x256xf32>
    %100 = arith.addf %99, %0 : vector<2x256xf32>
    %c1_79 = arith.constant 1 : index
    %c0_80 = arith.constant 0 : index
    %c0_81 = arith.constant 0 : index
    %c0_82 = arith.constant 0 : index
    %101 = vector.load %arg5[%c1_79, %c0_80, %c0_81, %c0_82] : memref<2x3x8x256xf32, #tpu.memory_space<vmem>>, vector<1x1x2x256xf32>
    %102 = vector.shape_cast %101 : vector<1x1x2x256xf32> to vector<2x256xf32>
    %103 = vector.shape_cast %100 : vector<2x256xf32> to vector<1x1x2x256xf32>
    tpu.vector_store %arg5[%c1_79, %c0_80, %c0_81, %c0_82], %103 {strides = array<i32>} : memref<2x3x8x256xf32, #tpu.memory_space<vmem>>, vector<1x1x2x256xf32>,
    %104 = vector.extract_strided_slice %86 {offsets = [2, 0], sizes = [2, 256], strides = [1, 1]} : vector<8x256xf32> to vector<2x256xf32>
    %105 = math.exp %104 : vector<2x256xf32>
    %c0_83 = arith.constant 0 : index
    %c2_84 = arith.constant 2 : index
    %c0_85 = arith.constant 0 : index
    %106 = vector.load %arg3[%c0_83, %c2_84, %c0_85] : memref<3x4x1xf32, #tpu.memory_space<vmem>>, vector<1x2x1xf32>
    %107 = vector.shape_cast %106 : vector<1x2x1xf32> to vector<2x1xf32>
    %108 = vector.broadcast %107 : vector<2x1xf32> to vector<2x256xf32>
    %109 = arith.mulf %105, %108 : vector<2x256xf32>
    %c1_86 = arith.constant 1 : index
    %c0_87 = arith.constant 0 : index
    %c2_88 = arith.constant 2 : index
    %c0_89 = arith.constant 0 : index
    %110 = vector.load %arg5[%c1_86, %c0_87, %c2_88, %c0_89] : memref<2x3x8x256xf32, #tpu.memory_space<vmem>>, vector<1x1x2x256xf32>
    %111 = vector.shape_cast %110 : vector<1x1x2x256xf32> to vector<2x256xf32>
    %112 = vector.shape_cast %109 : vector<2x256xf32> to vector<1x1x2x256xf32>
    tpu.vector_store %arg5[%c1_86, %c0_87, %c2_88, %c0_89], %112 {strides = array<i32>} : memref<2x3x8x256xf32, #tpu.memory_space<vmem>>, vector<1x1x2x256xf32>,
    %c1_90 = arith.constant 1 : index
    %c1_91 = arith.constant 1 : index
    %c0_92 = arith.constant 0 : index
    %c0_93 = arith.constant 0 : index
    %113 = vector.load %arg2[%c1_90, %c1_91, %c0_92, %c0_93] : memref<2x3x8x256xf32, #tpu.memory_space<vmem>>, vector<1x1x8x256xf32>
    %114 = vector.shape_cast %113 : vector<1x1x8x256xf32> to vector<8x256xf32>
    %115 = arith.negf %114 : vector<8x256xf32>
    %116 = math.exp %115 : vector<8x256xf32>
    %cst_94 = arith.constant 1.000000e+00 : f32
    %117 = vector.broadcast %cst_94 : f32 to vector<8x256xf32>
    %118 = arith.addf %117, %116 : vector<8x256xf32>
    %119 = arith.divf %117, %118 : vector<8x256xf32>
    %c1_95 = arith.constant 1 : index
    %c1_96 = arith.constant 1 : index
    %c0_97 = arith.constant 0 : index
    %c0_98 = arith.constant 0 : index
    %120 = vector.load %arg5[%c1_95, %c1_96, %c0_97, %c0_98] : memref<2x3x8x256xf32, #tpu.memory_space<vmem>>, vector<1x1x8x256xf32>
    %121 = vector.shape_cast %120 : vector<1x1x8x256xf32> to vector<8x256xf32>
    %122 = vector.shape_cast %119 : vector<8x256xf32> to vector<1x1x8x256xf32>
    tpu.vector_store %arg5[%c1_95, %c1_96, %c0_97, %c0_98], %122 {strides = array<i32>} : memref<2x3x8x256xf32, #tpu.memory_space<vmem>>, vector<1x1x8x256xf32>,
    %123 = vector.extract_strided_slice %119 {offsets = [0, 0], sizes = [2, 256], strides = [1, 1]} : vector<8x256xf32> to vector<2x256xf32>
    %c1_99 = arith.constant 1 : index
    %c0_100 = arith.constant 0 : index
    %c0_101 = arith.constant 0 : index
    %124 = vector.load %arg3[%c1_99, %c0_100, %c0_101] : memref<3x4x1xf32, #tpu.memory_space<vmem>>, vector<1x2x1xf32>
    %125 = vector.shape_cast %124 : vector<1x2x1xf32> to vector<2x1xf32>
    %126 = vector.broadcast %125 : vector<2x1xf32> to vector<2x256xf32>
    %127 = arith.mulf %123, %126 : vector<2x256xf32>
    %128 = arith.addf %127, %0 : vector<2x256xf32>
    %c1_102 = arith.constant 1 : index
    %c1_103 = arith.constant 1 : index
    %c0_104 = arith.constant 0 : index
    %c0_105 = arith.constant 0 : index
    %129 = vector.load %arg5[%c1_102, %c1_103, %c0_104, %c0_105] : memref<2x3x8x256xf32, #tpu.memory_space<vmem>>, vector<1x1x2x256xf32>
    %130 = vector.shape_cast %129 : vector<1x1x2x256xf32> to vector<2x256xf32>
    %131 = vector.shape_cast %128 : vector<2x256xf32> to vector<1x1x2x256xf32>
    tpu.vector_store %arg5[%c1_102, %c1_103, %c0_104, %c0_105], %131 {strides = array<i32>} : memref<2x3x8x256xf32, #tpu.memory_space<vmem>>, vector<1x1x2x256xf32>,
    %132 = vector.extract_strided_slice %114 {offsets = [2, 0], sizes = [2, 256], strides = [1, 1]} : vector<8x256xf32> to vector<2x256xf32>
    %133 = math.exp %132 : vector<2x256xf32>
    %c1_106 = arith.constant 1 : index
    %c2_107 = arith.constant 2 : index
    %c0_108 = arith.constant 0 : index
    %134 = vector.load %arg3[%c1_106, %c2_107, %c0_108] : memref<3x4x1xf32, #tpu.memory_space<vmem>>, vector<1x2x1xf32>
    %135 = vector.shape_cast %134 : vector<1x2x1xf32> to vector<2x1xf32>
    %136 = vector.broadcast %135 : vector<2x1xf32> to vector<2x256xf32>
    %137 = arith.mulf %133, %136 : vector<2x256xf32>
    %c1_109 = arith.constant 1 : index
    %c1_110 = arith.constant 1 : index
    %c2_111 = arith.constant 2 : index
    %c0_112 = arith.constant 0 : index
    %138 = vector.load %arg5[%c1_109, %c1_110, %c2_111, %c0_112] : memref<2x3x8x256xf32, #tpu.memory_space<vmem>>, vector<1x1x2x256xf32>
    %139 = vector.shape_cast %138 : vector<1x1x2x256xf32> to vector<2x256xf32>
    %140 = vector.shape_cast %137 : vector<2x256xf32> to vector<1x1x2x256xf32>
    tpu.vector_store %arg5[%c1_109, %c1_110, %c2_111, %c0_112], %140 {strides = array<i32>} : memref<2x3x8x256xf32, #tpu.memory_space<vmem>>, vector<1x1x2x256xf32>,
    %c1_113 = arith.constant 1 : index
    %c2_114 = arith.constant 2 : index
    %c0_115 = arith.constant 0 : index
    %c0_116 = arith.constant 0 : index
    %141 = vector.load %arg2[%c1_113, %c2_114, %c0_115, %c0_116] : memref<2x3x8x256xf32, #tpu.memory_space<vmem>>, vector<1x1x8x256xf32>
    %142 = vector.shape_cast %141 : vector<1x1x8x256xf32> to vector<8x256xf32>
    %143 = arith.negf %142 : vector<8x256xf32>
    %144 = math.exp %143 : vector<8x256xf32>
    %cst_117 = arith.constant 1.000000e+00 : f32
    %145 = vector.broadcast %cst_117 : f32 to vector<8x256xf32>
    %146 = arith.addf %145, %144 : vector<8x256xf32>
    %147 = arith.divf %145, %146 : vector<8x256xf32>
    %c1_118 = arith.constant 1 : index
    %c2_119 = arith.constant 2 : index
    %c0_120 = arith.constant 0 : index
    %c0_121 = arith.constant 0 : index
    %148 = vector.load %arg5[%c1_118, %c2_119, %c0_120, %c0_121] : memref<2x3x8x256xf32, #tpu.memory_space<vmem>>, vector<1x1x8x256xf32>
    %149 = vector.shape_cast %148 : vector<1x1x8x256xf32> to vector<8x256xf32>
    %150 = vector.shape_cast %147 : vector<8x256xf32> to vector<1x1x8x256xf32>
    tpu.vector_store %arg5[%c1_118, %c2_119, %c0_120, %c0_121], %150 {strides = array<i32>} : memref<2x3x8x256xf32, #tpu.memory_space<vmem>>, vector<1x1x8x256xf32>,
    %151 = vector.extract_strided_slice %147 {offsets = [0, 0], sizes = [2, 256], strides = [1, 1]} : vector<8x256xf32> to vector<2x256xf32>
    %c2_122 = arith.constant 2 : index
    %c0_123 = arith.constant 0 : index
    %c0_124 = arith.constant 0 : index
    %152 = vector.load %arg3[%c2_122, %c0_123, %c0_124] : memref<3x4x1xf32, #tpu.memory_space<vmem>>, vector<1x2x1xf32>
    %153 = vector.shape_cast %152 : vector<1x2x1xf32> to vector<2x1xf32>
    %154 = vector.broadcast %153 : vector<2x1xf32> to vector<2x256xf32>
    %155 = arith.mulf %151, %154 : vector<2x256xf32>
    %156 = arith.addf %155, %0 : vector<2x256xf32>
    %c1_125 = arith.constant 1 : index
    %c2_126 = arith.constant 2 : index
    %c0_127 = arith.constant 0 : index
    %c0_128 = arith.constant 0 : index
    %157 = vector.load %arg5[%c1_125, %c2_126, %c0_127, %c0_128] : memref<2x3x8x256xf32, #tpu.memory_space<vmem>>, vector<1x1x2x256xf32>
    %158 = vector.shape_cast %157 : vector<1x1x2x256xf32> to vector<2x256xf32>
    %159 = vector.shape_cast %156 : vector<2x256xf32> to vector<1x1x2x256xf32>
    tpu.vector_store %arg5[%c1_125, %c2_126, %c0_127, %c0_128], %159 {strides = array<i32>} : memref<2x3x8x256xf32, #tpu.memory_space<vmem>>, vector<1x1x2x256xf32>,
    %160 = vector.extract_strided_slice %142 {offsets = [2, 0], sizes = [2, 256], strides = [1, 1]} : vector<8x256xf32> to vector<2x256xf32>
    %161 = math.exp %160 : vector<2x256xf32>
    %c2_129 = arith.constant 2 : index
    %c2_130 = arith.constant 2 : index
    %c0_131 = arith.constant 0 : index
    %162 = vector.load %arg3[%c2_129, %c2_130, %c0_131] : memref<3x4x1xf32, #tpu.memory_space<vmem>>, vector<1x2x1xf32>
    %163 = vector.shape_cast %162 : vector<1x2x1xf32> to vector<2x1xf32>
    %164 = vector.broadcast %163 : vector<2x1xf32> to vector<2x256xf32>
    %165 = arith.mulf %161, %164 : vector<2x256xf32>
    %c1_132 = arith.constant 1 : index
    %c2_133 = arith.constant 2 : index
    %c2_134 = arith.constant 2 : index
    %c0_135 = arith.constant 0 : index
    %166 = vector.load %arg5[%c1_132, %c2_133, %c2_134, %c0_135] : memref<2x3x8x256xf32, #tpu.memory_space<vmem>>, vector<1x1x2x256xf32>
    %167 = vector.shape_cast %166 : vector<1x1x2x256xf32> to vector<2x256xf32>
    %168 = vector.shape_cast %165 : vector<2x256xf32> to vector<1x1x2x256xf32>
    tpu.vector_store %arg5[%c1_132, %c2_133, %c2_134, %c0_135], %168 {strides = array<i32>} : memref<2x3x8x256xf32, #tpu.memory_space<vmem>>, vector<1x1x2x256xf32>,
    return
  }
  func.func @transform_0(%arg0: i32, %arg1: i32) -> (i32, i32, i32, i32) {
    %c0_i32 = arith.constant 0 : i32
    %c0_i32_0 = arith.constant 0 : i32
    %c0_i32_1 = arith.constant 0 : i32
    return %arg0, %c0_i32, %c0_i32_0, %arg1 : i32, i32, i32, i32
  }
  func.func @transform_1(%arg0: i32, %arg1: i32) -> (i32, i32, i32) {
    %c0_i32 = arith.constant 0 : i32
    %c0_i32_0 = arith.constant 0 : i32
    %c0_i32_1 = arith.constant 0 : i32
    %c0_i32_2 = arith.constant 0 : i32
    return %c0_i32, %c0_i32_0, %c0_i32_1 : i32, i32, i32
  }
  func.func @transform_2(%arg0: i32, %arg1: i32) -> (i32, i32) {
    %c0_i32 = arith.constant 0 : i32
    %c0_i32_0 = arith.constant 0 : i32
    return %c0_i32, %arg1 : i32, i32
  }
  func.func @transform_3(%arg0: i32, %arg1: i32) -> (i32, i32, i32, i32) {
    %c0_i32 = arith.constant 0 : i32
    %c0_i32_0 = arith.constant 0 : i32
    %c0_i32_1 = arith.constant 0 : i32
    return %arg0, %c0_i32, %c0_i32_0, %arg1 : i32, i32, i32, i32
  }
}

</mosaic_0001>

<bundles_post_ra>
// kernel: tpu_custom_call.1
= control target key start
LH: loop header
LB: loop body
LE: loop exit
PB: predicated region body
PF: predicated region fallthrough
CT: control target
= control target key end

     0   :  { %8 = vsyncpa [#allocation3], 0  ;;  %s636_s0 = inlined_call_operand.hbm [shape: f32[2,3,8,256], index: 0, kind: input, shape index: {}]   ;;  %s637_s1 = inlined_call_operand.vmem [shape: f32[3,4,1], index: 1, kind: input, shape index: {}]   ;;  %s638_s2 = inlined_call_operand.vmem [shape: f32[8,256], index: 2, kind: input, shape index: {}]   ;;  %s639_s3 = inlined_call_operand.hbm [shape: f32[2,3,8,256], index: 3, kind: output, shape index: {}]  }
   0x1   :  { %9 = vsyncpa [#allocation4], 0  ;;  %s461_s12 = smov [#allocation2]  }
   0x2   :  { %s15_s13 = sshll.u32 %s461_s12, 4  ;;  %s16_s13 = int_to_ptr.vmem [resolvable:$true] %s15_s13 }
   0x3   :  { %s425_s14 = scalar_lea.vmem %s16_s13, 1536  ;;  %p430_p1 = scmp.lt.s32.totalorder %s16_s13, %s16_s13 }
   0x4   :  { %p426_p0 = scmp.ne.s32.totalorder %s16_s13, %s425_s14  ;;  %p431_p2 = scmp.lt.s32.totalorder %s425_s14, %s425_s14 }
   0x6   :  { %p432_p3 = por %p431_p2, %p430_p1 }
   0x8   :  { %p433_p4 = pnand %p432_p3, %p426_p0 }
   0xa   :  { %436 = shalt.err (!%p433_p4)
}
   0xb   :  { %s462_s15 = smov 256   ;;  %s463_s16 = smov 16  }
   0xc   :  { %21 = dma.hbm_to_vmem [thread:$0]  %s636_s0, 1536, %s16_s13, [#allocation3], %s462_s15, %s462_s15, %s463_s16  }
   0xd   :  { %457 = dma.done.wait [#allocation3], 1536  }
   0xe   :  { %458 = vsyncadd [#allocation3], 4294965760  ;;  %v464_v0 = vmov 0   ;;  %v322_v1 = vld [vmem:[%s637_s1 + $0x4] sm:$0x3]  ;;  %v510_v7 = vld [vmem:[#allocation2 + $0x10] sm:$0xff] }
   0xf   :  { %344 = vset.pattern.permute.xlu1 %v464_v0  ;;  %343 = vset.pattern.permute.xlu0 %v464_v0  ;;  %v47_v2 = vld [vmem:[%s637_s1] sm:$0x3]  ;;  %v323_v3 = vld [vmem:[%s637_s1 + $0x6] sm:$0x3]  ;;  %v63_v4 = vld [vmem:[%s637_s1 + $0x2] sm:$0x3] }
  0x10   :  { %96 = vperm.xlu1 %344, %v322_v1   ;;  %50 = vperm.xlu0 %343, %v47_v2   ;;  %v327_v5 = vld [vmem:[%s637_s1 + $0xa] sm:$0x3]  ;;  %v326_v6 = vld [vmem:[%s637_s1 + $0x8] sm:$0x3]  ;;  %v512_v8 = vld [vmem:[#allocation2 + $0x18] sm:$0xff] }
  0x11   :  { %v320_v9 = vmul.f32 -1.442695, %v510_v7  ;;  %v515_v10 = vld [vmem:[#allocation2] sm:$0xff]  ;;  %v517_v11 = vld [vmem:[#allocation2 + $0x8] sm:$0xff]  ;;  %v321_v12 = vmul.f32 -1.442695, %v512_v8 }
  0x12   :  { %v318_v13 = vmul.f32 -1.442695, %v515_v10  ;;  %v319_v14 = vmul.f32 -1.442695, %v517_v11  ;;  %v522_v15 = vld [vmem:[#allocation2 + $0x20] sm:$0xff]  ;;  %v524_v16 = vld [vmem:[#allocation2 + $0x28] sm:$0xff] }
  0x13   :  { %345 = vpow2.f32 %v320_v9  ;;  %v200_v17 = vld [vmem:[%s637_s1 + $0x2] sm:$0x3]  ;;  %v184_v18 = vld [vmem:[%s637_s1] sm:$0x3]  ;;  %v324_v19 = vmul.f32 -1.442695, %v522_v15 }
  0x14   :  { %112 = vperm.xlu1 %344, %v323_v3   ;;  %66 = vperm.xlu0 %343, %v63_v4   ;;  %347 = vpow2.f32 %v321_v12  ;;  %v325_v20 = vmul.f32 -1.442695, %v524_v16  ;;  %v534_v21 = vld [vmem:[#allocation2 + $0x30] sm:$0xff]  ;;  %v536_v22 = vld [vmem:[#allocation2 + $0x38] sm:$0xff]  ;;  %v333_v23 = vld [vmem:[%s637_s1 + $0x6] sm:$0x3] }
  0x15   :  { %349 = vpow2.f32 %v318_v13  ;;  %v332_v24 = vld [vmem:[%s637_s1 + $0x4] sm:$0x3]  ;;  %v328_v25 = vmul.f32 -1.442695, %v534_v21  ;;  %v329_v26 = vmul.f32 -1.442695, %v536_v22 }
  0x16   :  { %351 = vpow2.f32 %v319_v14  ;;  %v337_v27 = vld [vmem:[%s637_s1 + $0xa] sm:$0x3]  ;;  %v336_v28 = vld [vmem:[%s637_s1 + $0x8] sm:$0x3]  ;;  %v552_v30 = vld [vmem:[#allocation2 + $0x40] sm:$0xff] }
  0x17   :  { %353 = vpow2.f32 %v324_v19  ;;  %v554_v33 = vld [vmem:[#allocation2 + $0x48] sm:$0xff]  ;;  %v330_v38 = vmul.f32 -1.442695, %v552_v30  ;;  %v558_v41 = vld [vmem:[#allocation2 + $0x50] sm:$0xff]  ;;  %v560_v42 = vld [vmem:[#allocation2 + $0x58] sm:$0xff] }
  0x18   :  { %158 = vperm.xlu1 %344, %v327_v5   ;;  %142 = vperm.xlu0 %343, %v326_v6   ;;  %355 = vpow2.f32 %v325_v20  ;;  %v331_v40 = vmul.f32 -1.442695, %v554_v33  ;;  %v334_v46 = vmul.f32 -1.442695, %v558_v41  ;;  %v335_v48 = vmul.f32 -1.442695, %v560_v42 }
  0x19   :  { %357 = vpow2.f32 %v328_v25  ;;  %v105_v13 = vmul.f32 1.442695, %v510_v7  ;;  %v107_v14 = vmul.f32 1.442695, %v512_v8  ;;  %v151_v19 = vmul.f32 1.442695, %v522_v15 }
  0x1a   :  { %359 = vpow2.f32 %v329_v26  ;;  %v153_v20 = vmul.f32 1.442695, %v524_v16  ;;  %v198_v7 = vmul.f32 1.442695, %v536_v22  ;;  %v241_v8 = vmul.f32 1.442695, %v552_v30 }
  0x1b   :  { %v601_v15 = vld [vmem:[%s638_s2] sm:$0x3]  ;;  %v606_v16 = vld [vmem:[%s638_s2 + $0x8] sm:$0x3]  ;;  %v286_v22 = vmul.f32 1.442695, %v558_v41 }
  0x1c   :  { %203 = vperm.xlu1 %344, %v200_v17   ;;  %187 = vperm.xlu0 %343, %v184_v18   ;;  %v59_v17 = vmul.f32 1.442695, %v515_v10  ;;  %v61_v18 = vmul.f32 1.442695, %v517_v11  ;;  %v243_v10 = vmul.f32 1.442695, %v554_v33 }
  0x1d   :  { %v288_v30 = vmul.f32 1.442695, %v560_v42  ;;  %s465_s2 = smov [#allocation5]  }
  0x1e   :  { %s306_s20 = sshll.u32 %s465_s2, 4  ;;  %s307_s20 = int_to_ptr.vmem [resolvable:$true] %s306_s20 }
  0x1f   :  { %s437_s21 = scalar_lea.vmem %s307_s20, 1536  ;;  %p442_p6 = scmp.lt.s32.totalorder %s307_s20, %s307_s20 }
  0x20   :  { %248 = vperm.xlu1 %344, %v333_v23   ;;  %232 = vperm.xlu0 %343, %v332_v24   ;;  %v346_v29 = vpop.eup %345  ;;  %v196_v23 = vmul.f32 1.442695, %v534_v21  ;;  %p438_p5 = scmp.ne.s32.totalorder %s307_s20, %s437_s21  ;;  %p443_p7 = scmp.lt.s32.totalorder %s437_s21, %s437_s21 }
  0x21   :  { %v348_v31 = vpop.eup %347  ;;  %v83_v32 = vadd.f32 1.0, %v346_v29 }
  0x22   :  { %v350_v34 = vpop.eup %349  ;;  %v84_v35 = vadd.f32 1.0, %v348_v31  ;;  %p444_p8 = por %p443_p7, %p442_p6 }
  0x23   :  { %v352_v36 = vpop.eup %351  ;;  %361 = vrcp.f32 %v83_v32  ;;  %v39_v37 = vadd.f32 1.0, %v350_v34 }
  0x24   :  { %293 = vperm.xlu1 %344, %v337_v27   ;;  %277 = vperm.xlu0 %343, %v336_v28   ;;  %363 = vrcp.f32 %v84_v35  ;;  %v40_v39 = vadd.f32 1.0, %v352_v36  ;;  %v354_v43 = vpop.eup %353  ;;  %p445_p9 = pnand %p444_p8, %p438_p5 }
  0x25   :  { %365 = vrcp.f32 %v39_v37  ;;  %v356_v44 = vpop.eup %355  ;;  %v129_v45 = vadd.f32 1.0, %v354_v43 }
  0x26   :  { %367 = vrcp.f32 %v40_v39  ;;  %v130_v47 = vadd.f32 1.0, %v356_v44  ;;  %v358_v49 = vpop.eup %357 }
  0x27   :  { %369 = vpow2.f32 %v330_v38  ;;  %v360_v50 = vpop.eup %359  ;;  %v175_v51 = vadd.f32 1.0, %v358_v49 }
  0x28   :  { %371 = vpow2.f32 %v331_v40  ;;  %v176_v52 = vadd.f32 1.0, %v360_v50 }
  0x29   :  { %373 = vrcp.f32 %v129_v45 }
  0x2a   :  { %375 = vrcp.f32 %v130_v47 }
  0x2b   :  { %377 = vpow2.f32 %v334_v46 }
  0x2c   :  { %379 = vpow2.f32 %v335_v48 }
  0x2d   :  { %381 = vrcp.f32 %v175_v51 }
  0x2e   :  { %383 = vrcp.f32 %v176_v52 }
  0x30   :  { %v362_v53 = vpop.eup %361 }
  0x31   :  { %v364_v54 = vpop.eup %363  ;;  %90 = vst [vmem:[#allocation5 + $0x10] sm:$0xff] %v362_v53 }
  0x32   :  { %v366_v55 = vpop.eup %365  ;;  %91 = vst [vmem:[#allocation5 + $0x18] sm:$0xff] %v364_v54 }
  0x33   :  { %v368_v56 = vpop.eup %367  ;;  %45 = vst [vmem:[#allocation5] sm:$0xff] %v366_v55 }
  0x34   :  { %v370_v57 = vpop.eup %369  ;;  %46 = vst [vmem:[#allocation5 + $0x8] sm:$0xff] %v368_v56 }
  0x35   :  { %v372_v58 = vpop.eup %371  ;;  %v220_v59 = vadd.f32 1.0, %v370_v57 }
  0x36   :  { %v221_v60 = vadd.f32 1.0, %v372_v58  ;;  %v564_v61 = vpop.eup %373 }
  0x37   :  { %385 = vrcp.f32 %v220_v59  ;;  %v566_v62 = vpop.eup %375  ;;  %136 = vst [vmem:[#allocation5 + $0x20] sm:$0xff] %v564_v61 }
  0x38   :  { %387 = vrcp.f32 %v221_v60  ;;  %v378_v63 = vpop.eup %377  ;;  %137 = vst [vmem:[#allocation5 + $0x28] sm:$0xff] %v566_v62 }
  0x39   :  { %v380_v0 = vpop.eup %379  ;;  %v265_v1 = vadd.f32 1.0, %v378_v63 }
  0x3a   :  { %v570_v2 = vpop.eup %381  ;;  %v266_v3 = vadd.f32 1.0, %v380_v0 }
  0x3b   :  { %v572_v4 = vpop.eup %383  ;;  %182 = vst [vmem:[#allocation5 + $0x30] sm:$0xff] %v570_v2  ;;  %389 = vrcp.f32 %v265_v1 }
  0x3c   :  { %183 = vst [vmem:[#allocation5 + $0x38] sm:$0xff] %v572_v4  ;;  %391 = vrcp.f32 %v266_v3 }
  0x3d   :  { %393 = vpow2.f32 %v105_v13 }
  0x3e   :  { %395 = vpow2.f32 %v107_v14 }
  0x3f   :  { %397 = vpow2.f32 %v59_v17 }
  0x40   :  { %399 = vpow2.f32 %v61_v18 }
  0x41   :  { %401 = vpow2.f32 %v151_v19 }
  0x42   :  { %403 = vpow2.f32 %v153_v20 }
  0x43   :  { %405 = vpow2.f32 %v196_v23 }
  0x44   :  { %v576_v5 = vpop.eup %385  ;;  %407 = vpow2.f32 %v198_v7 }
  0x45   :  { %v578_v6 = vpop.eup %387  ;;  %227 = vst [vmem:[#allocation5 + $0x40] sm:$0xff] %v576_v5  ;;  %409 = vpow2.f32 %v241_v8 }
  0x46   :  { %228 = vst [vmem:[#allocation5 + $0x48] sm:$0xff] %v578_v6  ;;  %411 = vpow2.f32 %v243_v10 }
  0x47   :  { %413 = vpow2.f32 %v286_v22 }
  0x48   :  { %v582_v9 = vpop.eup %389  ;;  %415 = vpow2.f32 %v288_v30 }
  0x49   :  { %v584_v12 = vpop.eup %391  ;;  %272 = vst [vmem:[#allocation5 + $0x50] sm:$0xff] %v582_v9 }
  0x4a   :  { %273 = vst [vmem:[#allocation5 + $0x58] sm:$0xff] %v584_v12  ;;  %v394_v24 = vpop.eup %393 }
  0x4b   :  { %v396_v29 = vpop.eup %395 }
  0x4c   :  { %v398_v31 = vpop.eup %397 }
  0x4d   :  { %v400_v36 = vpop.eup %399 }
  0x4e   :  { %v402_v41 = vpop.eup %401 }
  0x4f   :  { %v404_v46 = vpop.eup %403 }
  0x50   :  { %v406_v52 = vpop.eup %405 }
  0x51   :  { %v408_v57 = vpop.eup %407 }
  0x52   :  { %v410_v60 = vpop.eup %409 }
  0x53   :  { %v412_v0 = vpop.eup %411 }
  0x54   :  { %v414_v23 = vpop.eup %413 }
  0x8b   :  { %v97_v11 = vpop.permute.xlu1 %96  ;;  %v51_v21 = vpop.permute.xlu0 %50 }
  0x8c   :  { %v99_v25 = vmul.f32 %v362_v53, %v97_v11  ;;  %v100_v26 = vmul.f32 %v364_v54, %v97_v11  ;;  %v53_v27 = vmul.f32 %v366_v55, %v51_v21  ;;  %v54_v28 = vmul.f32 %v368_v56, %v51_v21 }
  0x8e   :  { %v101_v32 = vadd.f32 %v99_v25, %v601_v15  ;;  %v102_v33 = vadd.f32 %v100_v26, %v606_v16  ;;  %v55_v34 = vadd.f32 %v53_v27, %v601_v15  ;;  %v56_v35 = vadd.f32 %v54_v28, %v606_v16 }
  0x8f   :  { %v113_v37 = vpop.permute.xlu1 %112  ;;  %v67_v38 = vpop.permute.xlu0 %66 }
  0x90   :  { %103 = vst [vmem:[#allocation5 + $0x10] sm:$0x3] %v101_v32  ;;  %104 = vst [vmem:[#allocation5 + $0x18] sm:$0x3] %v102_v33  ;;  %v114_v39 = vrot.slane %v113_v37, 6  ;;  %v68_v40 = vrot.slane %v67_v38, 6 }
  0x91   :  { %57 = vst [vmem:[#allocation5] sm:$0x3] %v55_v34  ;;  %58 = vst [vmem:[#allocation5 + $0x8] sm:$0x3] %v56_v35 }
  0x92   :  { %v116_v42 = vmul.f32 %v394_v24, %v114_v39  ;;  %v117_v43 = vmul.f32 %v396_v29, %v114_v39  ;;  %v70_v44 = vmul.f32 %v398_v31, %v68_v40  ;;  %v71_v45 = vmul.f32 %v400_v36, %v68_v40 }
  0x93   :  { %v159_v47 = vpop.permute.xlu1 %158  ;;  %v143_v48 = vpop.permute.xlu0 %142 }
  0x94   :  { %118 = vst [vmem:[#allocation5 + $0x10] sm:$0xc] %v116_v42  ;;  %119 = vst [vmem:[#allocation5 + $0x18] sm:$0xc] %v117_v43  ;;  %v160_v49 = vrot.slane %v159_v47, 6  ;;  %v145_v50 = vmul.f32 %v564_v61, %v143_v48  ;;  %v146_v51 = vmul.f32 %v566_v62, %v143_v48 }
  0x95   :  { %72 = vst [vmem:[#allocation5] sm:$0xc] %v70_v44  ;;  %73 = vst [vmem:[#allocation5 + $0x8] sm:$0xc] %v71_v45 }
  0x96   :  { %v162_v53 = vmul.f32 %v402_v41, %v160_v49  ;;  %v163_v54 = vmul.f32 %v404_v46, %v160_v49  ;;  %v147_v55 = vadd.f32 %v145_v50, %v601_v15  ;;  %v148_v56 = vadd.f32 %v146_v51, %v606_v16 }
  0x97   :  { %v204_v58 = vpop.permute.xlu1 %203  ;;  %v188_v59 = vpop.permute.xlu0 %187 }
  0x98   :  { %164 = vst [vmem:[#allocation5 + $0x20] sm:$0xc] %v162_v53  ;;  %165 = vst [vmem:[#allocation5 + $0x28] sm:$0xc] %v163_v54  ;;  %v205_v63 = vrot.slane %v204_v58, 6  ;;  %v190_v61 = vmul.f32 %v570_v2, %v188_v59  ;;  %v191_v62 = vmul.f32 %v572_v4, %v188_v59  ;;  %v416_v4 = vpop.eup %415 }
  0x99   :  { %149 = vst [vmem:[#allocation5 + $0x20] sm:$0x3] %v147_v55  ;;  %150 = vst [vmem:[#allocation5 + $0x28] sm:$0x3] %v148_v56 }
  0x9a   :  { %v207_v1 = vmul.f32 %v406_v52, %v205_v63  ;;  %v208_v3 = vmul.f32 %v408_v57, %v205_v63  ;;  %v192_v13 = vadd.f32 %v190_v61, %v601_v15  ;;  %v193_v14 = vadd.f32 %v191_v62, %v606_v16 }
  0x9b   :  { %v249_v17 = vpop.permute.xlu1 %248  ;;  %v233_v18 = vpop.permute.xlu0 %232 }
  0x9c   :  { %209 = vst [vmem:[#allocation5 + $0x30] sm:$0xc] %v207_v1  ;;  %210 = vst [vmem:[#allocation5 + $0x38] sm:$0xc] %v208_v3  ;;  %v250_v19 = vrot.slane %v249_v17, 6  ;;  %v235_v20 = vmul.f32 %v576_v5, %v233_v18  ;;  %v236_v2 = vmul.f32 %v578_v6, %v233_v18 }
  0x9d   :  { %194 = vst [vmem:[#allocation5 + $0x30] sm:$0x3] %v192_v13  ;;  %195 = vst [vmem:[#allocation5 + $0x38] sm:$0x3] %v193_v14 }
  0x9e   :  { %v252_v7 = vmul.f32 %v410_v60, %v250_v19  ;;  %v253_v8 = vmul.f32 %v412_v0, %v250_v19  ;;  %v237_v10 = vadd.f32 %v235_v20, %v601_v15  ;;  %v238_v11 = vadd.f32 %v236_v2, %v606_v16 }
  0x9f   :  { %v294_v21 = vpop.permute.xlu1 %293  ;;  %v278_v22 = vpop.permute.xlu0 %277 }
  0xa0   :  { %254 = vst [vmem:[#allocation5 + $0x40] sm:$0xc] %v252_v7  ;;  %255 = vst [vmem:[#allocation5 + $0x48] sm:$0xc] %v253_v8  ;;  %v295_v24 = vrot.slane %v294_v21, 6  ;;  %v280_v5 = vmul.f32 %v582_v9, %v278_v22  ;;  %v281_v6 = vmul.f32 %v584_v12, %v278_v22 }
  0xa1   :  { %239 = vst [vmem:[#allocation5 + $0x40] sm:$0x3] %v237_v10  ;;  %240 = vst [vmem:[#allocation5 + $0x48] sm:$0x3] %v238_v11 }
  0xa2   :  { %v297_v25 = vmul.f32 %v414_v23, %v295_v24  ;;  %v298_v26 = vmul.f32 %v416_v4, %v295_v24  ;;  %v282_v27 = vadd.f32 %v280_v5, %v601_v15  ;;  %v283_v28 = vadd.f32 %v281_v6, %v606_v16 }
  0xa4   :  { %299 = vst [vmem:[#allocation5 + $0x50] sm:$0xc] %v297_v25  ;;  %300 = vst [vmem:[#allocation5 + $0x58] sm:$0xc] %v298_v26 }
  0xa5   :  { %284 = vst [vmem:[#allocation5 + $0x50] sm:$0x3] %v282_v27  ;;  %285 = vst [vmem:[#allocation5 + $0x58] sm:$0x3] %v283_v28 }
  0xa6   :  { %448 = shalt.err (!%p445_p9)
}
  0xa7   :  { %312 = dma.vmem_to_hbm [thread:$0]  %s307_s20, 1536, %s639_s3, [#allocation4], %s462_s15, %s462_s15, %s463_s16  }
  0xa8   :  { %459 = dma.done.wait [#allocation4], 1536  }
  0xa9   :  { %460 = vsyncadd [#allocation4], 4294965760 }
  0xaa   :  { %316 = vsyncpa [#allocation3], 1 }
  0xab   :  { %317 = vsyncpa [#allocation4], 1 }

</bundles_post_ra>
